<compile_context>
chip_gen: v7x
topology: tpu7x:2x2x1
jax: 0.10.0
libtpu: 0.0.40
codegen_flags: <defaults>
</compile_context>

<pallas_src>
import math

import jax
import jax.numpy as jnp
from jax.experimental import pallas as pl
from jax.experimental.pallas import tpu as pltpu


_LN_EPS = 1e-5                       # torch.nn.LayerNorm default
_GELU_C = math.sqrt(2.0 / math.pi)   # module defines its own tanh-GELU


# ----------------------------------------------------------------------------
# Parameter / buffer construction (plain JAX glue, deterministic)
# ----------------------------------------------------------------------------
def make_pe_table(d_model: int, max_len: int = 2000) -> jnp.ndarray:
    position = jnp.arange(0, max_len, dtype=jnp.float32)[:, None]            # (L, 1)
    div_term = jnp.exp(
        jnp.arange(0, d_model, 2, dtype=jnp.float32) * (-math.log(10000.0) / d_model)
    )                                                                         # (D/2,)
    angles = position * div_term                                              # (L, D/2)
    pe = jnp.zeros((max_len, d_model), dtype=jnp.float32)
    pe = pe.at[:, 0::2].set(jnp.sin(angles))
    pe = pe.at[:, 1::2].set(jnp.cos(angles))
    return pe                                                                 # (L, D)


def init_block_params(key, d_model: int, d_ff: int):
    """One TransformerBlock's parameters (JAX (in, out) weight convention).

    wq/wk/bq/bk are only used by the pure-JAX reference (they provably cancel
    out of the forward because the attention sequence length is 1)."""
    ks = jax.random.split(key, 10)
    sd = 1.0 / math.sqrt(d_model)
    sf = 1.0 / math.sqrt(d_ff)
    u = jax.random.uniform
    return dict(
        ln1_w=1.0 + 0.1 * jax.random.normal(ks[0], (1, d_model), jnp.float32),
        ln1_b=0.1 * jax.random.normal(ks[1], (1, d_model), jnp.float32),
        wq=u(ks[2], (d_model, d_model), jnp.float32, -sd, sd),
        bq=u(ks[2], (1, d_model), jnp.float32, -sd, sd),
        wk=u(ks[3], (d_model, d_model), jnp.float32, -sd, sd),
        bk=u(ks[3], (1, d_model), jnp.float32, -sd, sd),
        wv=u(ks[4], (d_model, d_model), jnp.float32, -sd, sd),
        bv=u(ks[5], (1, d_model), jnp.float32, -sd, sd),
        wo=u(ks[6], (d_model, d_model), jnp.float32, -sd, sd),
        bo=u(ks[6], (1, d_model), jnp.float32, -sd, sd),
        ln2_w=1.0 + 0.1 * jax.random.normal(ks[7], (1, d_model), jnp.float32),
        ln2_b=0.1 * jax.random.normal(ks[7], (1, d_model), jnp.float32),
        w1=u(ks[8], (d_model, d_ff), jnp.float32, -sd, sd),
        b1=u(ks[8], (1, d_ff), jnp.float32, -sd, sd),
        w2=u(ks[9], (d_ff, d_model), jnp.float32, -sf, sf),
        b2=u(ks[9], (1, d_model), jnp.float32, -sf, sf),
    )


# ----------------------------------------------------------------------------
# VMEM / tiling helpers
# ----------------------------------------------------------------------------
def _round_up(n: int, m: int) -> int:
    return ((n + m - 1) // m) * m


def _vmem_limit_bytes() -> int:
    """~3/4 of physical per-core VMEM: ~48 MiB on v7x (64 MiB physical),
    ~96 MiB on v5e/v6e (128 MiB physical).  Safe fallback = 48 MiB."""
    try:
        cap = getattr(pltpu.get_tpu_info(), "vmem_capacity_bytes", None)
        if cap:
            return int(cap) * 3 // 4
    except Exception:
        pass
    return 48 * 1024 * 1024


def _derive_row_tile(n_rows: int, max_width: int, vmem_limit: int,
                     *, n_live: int = 8, max_rows: int = 1024) -> int:
    """Rows per grid step.

    Budget = vmem_limit/8 shared by ~n_live live (ts, max_width) f32
    intermediates (residual, LN outputs, FF hidden, GELU, ...), so big tiles
    don't spill.  Capped at `max_rows` (measured sweet spot 512-1024), capped
    so the row grid has >=4 steps when possible (megacore / pipeline), always
    a multiple of 8 and >= 8."""
    row_bytes = max(max_width, 1) * 4
    budget = vmem_limit // 8
    rows = (budget // (n_live * row_bytes)) // 8 * 8
    rows = min(rows, max_rows)
    rows = min(rows, max(8, _round_up(pl.cdiv(n_rows, 4), 8)))   # aim for >=4 steps
    rows = min(rows, _round_up(n_rows, 8))
    return int(max(8, rows))


def _resident_spec(shape):
    """Whole-array weight block with a constant index map (stays resident
    across the row grid).  Single-buffered when supported: the block never
    changes, so 2-deep buffering only wastes VMEM (matters on v7x)."""
    idx = lambda i: (0,) * len(shape)
    buffered = getattr(pl, "Buffered", None)
    if buffered is not None:
        try:
            return pl.BlockSpec(shape, idx, pipeline_mode=buffered(1))
        except (TypeError, ValueError):
            pass
    return pl.BlockSpec(shape, idx)


# ----------------------------------------------------------------------------
# Fused kernel
# ----------------------------------------------------------------------------
def _layernorm(x, w, b):
    # One-pass statistics: mean(x) and mean(x*x) are independent lane
    # reductions (shorter XLU chain than mean -> centered variance).
    mu = jnp.mean(x, axis=-1, keepdims=True)
    mu2 = jnp.mean(x * x, axis=-1, keepdims=True)
    var = jnp.maximum(mu2 - mu * mu, 0.0)
    return (x - mu) * jax.lax.rsqrt(var + _LN_EPS) * w + b


def _gelu_tanh(x):
    return 0.5 * x * (1.0 + jnp.tanh(_GELU_C * (x + 0.044715 * x * x * x)))


def _make_stacked_blocks_kernel(n_layers: int, with_pe: bool):
    """(optional PE add) + n_layers fused transformer blocks on one resident
    (ts, D) row tile.  Weights are stacked along a leading layer axis.
    Attention is the folded single matmul (valid exactly because the PyTorch
    module's attention sequence length is structurally 1)."""

    def kernel(*refs):
        if with_pe:
            x_ref, pe_ref = refs[0], refs[1]
            w = refs[2:-1]
        else:
            x_ref, pe_ref = refs[0], None
            w = refs[1:-1]
        o_ref = refs[-1]
        (ln1w_ref, ln1b_ref, watt_ref, batt_ref,
         ln2w_ref, ln2b_ref, w1_ref, b1_ref, w2_ref, b2_ref) = w

        y = x_ref[...]
        if with_pe:
            y = y + pe_ref[...]                 # PE add fused (dropout = id)

        # Static unroll over layers; static leading-index slices are free.
        for l in range(n_layers):
            # --- attention sublayer (folded: h @ WvWo + (bvWo + bo)) ---
            h = _layernorm(y, ln1w_ref[l], ln1b_ref[l])
            a = jnp.dot(h.astype(watt_ref.dtype), watt_ref[l],
                        preferred_element_type=jnp.float32) + batt_ref[l]
            y = y + a                            # residual (dropout = id)
            # --- feed-forward sublayer ---
            h2 = _layernorm(y, ln2w_ref[l], ln2b_ref[l])
            u = jnp.dot(h2.astype(w1_ref.dtype), w1_ref[l],
                        preferred_element_type=jnp.float32) + b1_ref[l]
            g = _gelu_tanh(u)
            f = jnp.dot(g.astype(w2_ref.dtype), w2_ref[l],
                        preferred_element_type=jnp.float32) + b2_ref[l]
            y = y + f                            # residual; block dropout = id
        o_ref[...] = y.astype(o_ref.dtype)

    return kernel


# ----------------------------------------------------------------------------
# Wrappers
# ----------------------------------------------------------------------------
_WEIGHT_ORDER = ("ln1_w", "ln1_b", "w_att", "b_att",
                 "ln2_w", "ln2_b", "w1", "b1", "w2", "b2")


def fold_and_stack_params(layer_params, matmul_dtype=jnp.float32):
    """Fold attention (W_att = Wv Wo, b_att = bv Wo + bo) and stack all layers
    along a leading axis.  `matmul_dtype=jnp.bfloat16` optionally stores the
    matmul weights in bf16 (f32 accumulation kept in-kernel) for MXU-bound
    sizes; default f32 to match the PyTorch numerics exactly."""
    def stack(fn):
        return jnp.stack([fn(p) for p in layer_params], axis=0)

    return dict(
        ln1_w=stack(lambda p: p["ln1_w"]),
        ln1_b=stack(lambda p: p["ln1_b"]),
        w_att=stack(lambda p: (p["wv"] @ p["wo"]).astype(matmul_dtype)),
        b_att=stack(lambda p: p["bv"] @ p["wo"] + p["bo"]),
        ln2_w=stack(lambda p: p["ln2_w"]),
        ln2_b=stack(lambda p: p["ln2_b"]),
        w1=stack(lambda p: p["w1"].astype(matmul_dtype)),
        b1=stack(lambda p: p["b1"]),
        w2=stack(lambda p: p["w2"].astype(matmul_dtype)),
        b2=stack(lambda p: p["b2"]),
    )


def _run_stacked_blocks(x, pe, stacked, *, with_pe, vmem_limit):
    S, D = x.shape
    L = stacked["w_att"].shape[0]
    d_ff = stacked["w1"].shape[2]
    ts = _derive_row_tile(S, max(D, d_ff), vmem_limit)
    grid = (pl.cdiv(S, ts),)

    row_spec = pl.BlockSpec((ts, D), lambda i: (i, 0))
    in_specs = [row_spec]
    inputs = [x]
    if with_pe:
        # Full PE table passed; only the first ceil(S/ts) row blocks are fetched.
        in_specs.append(pl.BlockSpec((ts, D), lambda i: (i, 0)))
        inputs.append(pe)
    for k in _WEIGHT_ORDER:
        in_specs.append(_resident_spec(stacked[k].shape))
        inputs.append(stacked[k])

    return pl.pallas_call(
        _make_stacked_blocks_kernel(L, with_pe),
        out_shape=jax.ShapeDtypeStruct((S, D), x.dtype),
        grid_spec=pltpu.PrefetchScalarGridSpec(
            num_scalar_prefetch=0,
            grid=grid,
            in_specs=in_specs,
            out_specs=row_spec,
        ),
        compiler_params=pltpu.CompilerParams(
            dimension_semantics=("parallel",),
            vmem_limit_bytes=vmem_limit,
        ),
    )(*inputs)


def transformer_globalizing_blocks(x, pe, layer_params, *, matmul_dtype=jnp.float32):
    """Full module forward.  x: (N, input_dim) -> (N, input_dim).

    The per-layer loop is fused into (ideally) a single pallas_call so
    activations never round-trip HBM between layers; if the stacked weights
    would not fit in VMEM, layers are chunked across calls (PE fused into the
    first chunk only)."""
    S, D = x.shape
    vmem_limit = _vmem_limit_bytes()
    d_ff = layer_params[0]["w1"].shape[1]
    itemsize = jnp.dtype(matmul_dtype).itemsize
    per_layer_bytes = (D * D + 2 * D * d_ff) * itemsize + (8 * D + d_ff) * 4
    weight_budget = max(per_layer_bytes, int(vmem_limit * 0.4))
    layers_per_call = max(1, min(len(layer_params), weight_budget // per_layer_bytes))

    y = x
    first = True
    for start in range(0, len(layer_params), layers_per_call):
        chunk = layer_params[start:start + layers_per_call]
        stacked = fold_and_stack_params(chunk, matmul_dtype)
        y = _run_stacked_blocks(y, pe, stacked, with_pe=first, vmem_limit=vmem_limit)
        first = False
    return y


# ----------------------------------------------------------------------------
# Pure-JAX reference (full multi-head attention, softmax over the length-1 seq)
# ----------------------------------------------------------------------------
def _ln_ref(x, w, b):
    mu = x.mean(-1, keepdims=True)
    var = ((x - mu) ** 2).mean(-1, keepdims=True)
    return (x - mu) / jnp.sqrt(var + _LN_EPS) * w + b


def _mha_ref(y, p, num_head):
    n, d = y.shape
    dk = d // num_head
    q = (y @ p["wq"] + p["bq"]).reshape(n, 1, num_head, dk).transpose(0, 2, 1, 3)
    k = (y @ p["wk"] + p["bk"]).reshape(n, 1, num_head, dk).transpose(0, 2, 1, 3)
    v = (y @ p["wv"] + p["bv"]).reshape(n, 1, num_head, dk).transpose(0, 2, 1, 3)
    scores = jnp.einsum("nhqd,nhkd->nhqk", q, k) / math.sqrt(dk)     # (n, h, 1, 1)
    attn = jax.nn.softmax(scores, axis=-1)                           # == 1.0
    ctx = jnp.einsum("nhqk,nhkd->nhqd", attn, v)
    ctx = ctx.transpose(0, 2, 1, 3).reshape(n, d)
    return ctx @ p["wo"] + p["bo"]


def _reference_forward(x, pe, layer_params, num_head):
    s, _ = x.shape
    y = x + pe[:s]
    for p in layer_params:
        y = y + _mha_ref(_ln_ref(y, p["ln1_w"], p["ln1_b"]), p, num_head)
        h = _ln_ref(y, p["ln2_w"], p["ln2_b"])
        u = h @ p["w1"] + p["b1"]
        g = 0.5 * u * (1.0 + jnp.tanh(_GELU_C * (u + 0.044715 * u ** 3)))
        y = y + g @ p["w2"] + p["b2"]
    return y


# ----------------------------------------------------------------------------
# Test
# ----------------------------------------------------------------------------
if __name__ == "__main__":
    key = jax.random.PRNGKey(0)
    N, D, HEADS, LAYERS = 16, 32, 8, 2        # rows=16, input_dim=32, 8 heads, 2 layers
    kx, kp = jax.random.split(key)

    x = jax.random.normal(kx, (N, D), dtype=jnp.float32)
    pe = make_pe_table(D, max_len=2000)
    layer_params = [init_block_params(k, D, 4 * D) for k in jax.random.split(kp, LAYERS)]

    out = transformer_globalizing_blocks(x, pe, layer_params)
    out = jax.block_until_ready(out)
    assert out.shape == (N, D)
    assert bool(jnp.all(jnp.isfinite(out)))

    ref = _reference_forward(x, pe, layer_params, HEADS)
    err = float(jnp.max(jnp.abs(out - ref)))
    assert jnp.allclose(out, ref, atol=1e-3, rtol=1e-3), err

    print("KERNEL_OK")
</pallas_src>

<mosaic_0001>
module attributes {stable_mosaic.version = 11 : i64} {
  func.func @kernel(%arg0: i32, %arg1: memref<8x32xf32, #tpu.memory_space<vmem>>, %arg2: memref<8x32xf32, #tpu.memory_space<vmem>>, %arg3: memref<2x1x32xf32, #tpu.memory_space<vmem>>, %arg4: memref<2x1x32xf32, #tpu.memory_space<vmem>>, %arg5: memref<2x32x32xf32, #tpu.memory_space<vmem>>, %arg6: memref<2x1x32xf32, #tpu.memory_space<vmem>>, %arg7: memref<2x1x32xf32, #tpu.memory_space<vmem>>, %arg8: memref<2x1x32xf32, #tpu.memory_space<vmem>>, %arg9: memref<2x32x128xf32, #tpu.memory_space<vmem>>, %arg10: memref<2x1x128xf32, #tpu.memory_space<vmem>>, %arg11: memref<2x128x32xf32, #tpu.memory_space<vmem>>, %arg12: memref<2x1x32xf32, #tpu.memory_space<vmem>>, %arg13: memref<8x32xf32, #tpu.memory_space<vmem>>) attributes {dimension_semantics = [#tpu.dimension_semantics<parallel>], iteration_bounds = array<i64: 2>, scalar_prefetch = 0 : i64, scratch_operands = 0 : i64, tpu.core_type = #tpu.core_type<tc>, window_params = [{transform_indices = @transform_0, window_bounds = array<i64: 8, 32>}, {transform_indices = @transform_1, window_bounds = array<i64: 8, 32>}, {pipeline_mode = #tpu.pipeline_mode<synchronous>, transform_indices = @transform_2, window_bounds = array<i64: 2, 1, 32>}, {pipeline_mode = #tpu.pipeline_mode<synchronous>, transform_indices = @transform_3, window_bounds = array<i64: 2, 1, 32>}, {pipeline_mode = #tpu.pipeline_mode<synchronous>, transform_indices = @transform_4, window_bounds = array<i64: 2, 32, 32>}, {pipeline_mode = #tpu.pipeline_mode<synchronous>, transform_indices = @transform_5, window_bounds = array<i64: 2, 1, 32>}, {pipeline_mode = #tpu.pipeline_mode<synchronous>, transform_indices = @transform_6, window_bounds = array<i64: 2, 1, 32>}, {pipeline_mode = #tpu.pipeline_mode<synchronous>, transform_indices = @transform_7, window_bounds = array<i64: 2, 1, 32>}, {pipeline_mode = #tpu.pipeline_mode<synchronous>, transform_indices = @transform_8, window_bounds = array<i64: 2, 32, 128>}, {pipeline_mode = #tpu.pipeline_mode<synchronous>, transform_indices = @transform_9, window_bounds = array<i64: 2, 1, 128>}, {pipeline_mode = #tpu.pipeline_mode<synchronous>, transform_indices = @transform_10, window_bounds = array<i64: 2, 128, 32>}, {pipeline_mode = #tpu.pipeline_mode<synchronous>, transform_indices = @transform_11, window_bounds = array<i64: 2, 1, 32>}, {transform_indices = @transform_12, window_bounds = array<i64: 8, 32>}]} {
    %c0 = arith.constant 0 : index
    %c0_0 = arith.constant 0 : index
    %0 = vector.load %arg1[%c0, %c0_0] : memref<8x32xf32, #tpu.memory_space<vmem>>, vector<8x32xf32>
    %c0_1 = arith.constant 0 : index
    %c0_2 = arith.constant 0 : index
    %1 = vector.load %arg2[%c0_1, %c0_2] : memref<8x32xf32, #tpu.memory_space<vmem>>, vector<8x32xf32>
    %2 = arith.addf %0, %1 : vector<8x32xf32>
    %c0_3 = arith.constant 0 : index
    %c0_4 = arith.constant 0 : index
    %c0_5 = arith.constant 0 : index
    %3 = vector.load %arg3[%c0_3, %c0_4, %c0_5] : memref<2x1x32xf32, #tpu.memory_space<vmem>>, vector<1x1x32xf32>
    %4 = vector.shape_cast %3 : vector<1x1x32xf32> to vector<1x32xf32>
    %c0_6 = arith.constant 0 : index
    %c0_7 = arith.constant 0 : index
    %c0_8 = arith.constant 0 : index
    %5 = vector.load %arg4[%c0_6, %c0_7, %c0_8] : memref<2x1x32xf32, #tpu.memory_space<vmem>>, vector<1x1x32xf32>
    %6 = vector.shape_cast %5 : vector<1x1x32xf32> to vector<1x32xf32>
    %cst = arith.constant dense<0.000000e+00> : vector<8xf32>
    %7 = vector.multi_reduction <add>, %2, %cst [1] : vector<8x32xf32> to vector<8xf32>
    %8 = vector.shape_cast %7 : vector<8xf32> to vector<8x1xf32>
    %cst_9 = arith.constant 3.200000e+01 : f32
    %9 = vector.broadcast %cst_9 : f32 to vector<8x1xf32>
    %10 = arith.divf %8, %9 : vector<8x1xf32>
    %11 = arith.mulf %2, %2 : vector<8x32xf32>
    %cst_10 = arith.constant dense<0.000000e+00> : vector<8xf32>
    %12 = vector.multi_reduction <add>, %11, %cst_10 [1] : vector<8x32xf32> to vector<8xf32>
    %13 = vector.shape_cast %12 : vector<8xf32> to vector<8x1xf32>
    %cst_11 = arith.constant 3.200000e+01 : f32
    %14 = vector.broadcast %cst_11 : f32 to vector<8x1xf32>
    %15 = arith.divf %13, %14 : vector<8x1xf32>
    %16 = arith.mulf %10, %10 : vector<8x1xf32>
    %17 = arith.subf %15, %16 : vector<8x1xf32>
    %cst_12 = arith.constant 0.000000e+00 : f32
    %18 = vector.broadcast %cst_12 : f32 to vector<8x1xf32>
    %19 = arith.maximumf %17, %18 : vector<8x1xf32>
    %20 = vector.broadcast %10 : vector<8x1xf32> to vector<8x32xf32>
    %21 = arith.subf %2, %20 : vector<8x32xf32>
    %cst_13 = arith.constant 9.99999974E-6 : f32
    %22 = vector.broadcast %cst_13 : f32 to vector<8x1xf32>
    %23 = arith.addf %19, %22 : vector<8x1xf32>
    %24 = math.rsqrt %23 : vector<8x1xf32>
    %25 = vector.broadcast %24 : vector<8x1xf32> to vector<8x32xf32>
    %26 = arith.mulf %21, %25 : vector<8x32xf32>
    %27 = vector.broadcast %4 : vector<1x32xf32> to vector<8x32xf32>
    %28 = arith.mulf %26, %27 : vector<8x32xf32>
    %29 = vector.broadcast %6 : vector<1x32xf32> to vector<8x32xf32>
    %30 = arith.addf %28, %29 : vector<8x32xf32>
    %c0_14 = arith.constant 0 : index
    %c0_15 = arith.constant 0 : index
    %c0_16 = arith.constant 0 : index
    %31 = vector.load %arg5[%c0_14, %c0_15, %c0_16] : memref<2x32x32xf32, #tpu.memory_space<vmem>>, vector<1x32x32xf32>
    %32 = vector.shape_cast %31 : vector<1x32x32xf32> to vector<32x32xf32>
    %cst_17 = arith.constant dense<0.000000e+00> : vector<8x32xf32>
    %33 = tpu.matmul %30, %32, %cst_17 {dimension_numbers = #tpu.dot_dimension_numbers<[1], [0], [0], [1], [0, 0, 1, 1], [], []>} : vector<8x32xf32>, vector<32x32xf32>, vector<8x32xf32> -> vector<8x32xf32>
    %c0_18 = arith.constant 0 : index
    %c0_19 = arith.constant 0 : index
    %c0_20 = arith.constant 0 : index
    %34 = vector.load %arg6[%c0_18, %c0_19, %c0_20] : memref<2x1x32xf32, #tpu.memory_space<vmem>>, vector<1x1x32xf32>
    %35 = vector.shape_cast %34 : vector<1x1x32xf32> to vector<1x32xf32>
    %36 = vector.broadcast %35 : vector<1x32xf32> to vector<8x32xf32>
    %37 = arith.addf %33, %36 : vector<8x32xf32>
    %38 = arith.addf %2, %37 : vector<8x32xf32>
    %c0_21 = arith.constant 0 : index
    %c0_22 = arith.constant 0 : index
    %c0_23 = arith.constant 0 : index
    %39 = vector.load %arg7[%c0_21, %c0_22, %c0_23] : memref<2x1x32xf32, #tpu.memory_space<vmem>>, vector<1x1x32xf32>
    %40 = vector.shape_cast %39 : vector<1x1x32xf32> to vector<1x32xf32>
    %c0_24 = arith.constant 0 : index
    %c0_25 = arith.constant 0 : index
    %c0_26 = arith.constant 0 : index
    %41 = vector.load %arg8[%c0_24, %c0_25, %c0_26] : memref<2x1x32xf32, #tpu.memory_space<vmem>>, vector<1x1x32xf32>
    %42 = vector.shape_cast %41 : vector<1x1x32xf32> to vector<1x32xf32>
    %cst_27 = arith.constant dense<0.000000e+00> : vector<8xf32>
    %43 = vector.multi_reduction <add>, %38, %cst_27 [1] : vector<8x32xf32> to vector<8xf32>
    %44 = vector.shape_cast %43 : vector<8xf32> to vector<8x1xf32>
    %cst_28 = arith.constant 3.200000e+01 : f32
    %45 = vector.broadcast %cst_28 : f32 to vector<8x1xf32>
    %46 = arith.divf %44, %45 : vector<8x1xf32>
    %47 = arith.mulf %38, %38 : vector<8x32xf32>
    %cst_29 = arith.constant dense<0.000000e+00> : vector<8xf32>
    %48 = vector.multi_reduction <add>, %47, %cst_29 [1] : vector<8x32xf32> to vector<8xf32>
    %49 = vector.shape_cast %48 : vector<8xf32> to vector<8x1xf32>
    %cst_30 = arith.constant 3.200000e+01 : f32
    %50 = vector.broadcast %cst_30 : f32 to vector<8x1xf32>
    %51 = arith.divf %49, %50 : vector<8x1xf32>
    %52 = arith.mulf %46, %46 : vector<8x1xf32>
    %53 = arith.subf %51, %52 : vector<8x1xf32>
    %cst_31 = arith.constant 0.000000e+00 : f32
    %54 = vector.broadcast %cst_31 : f32 to vector<8x1xf32>
    %55 = arith.maximumf %53, %54 : vector<8x1xf32>
    %56 = vector.broadcast %46 : vector<8x1xf32> to vector<8x32xf32>
    %57 = arith.subf %38, %56 : vector<8x32xf32>
    %cst_32 = arith.constant 9.99999974E-6 : f32
    %58 = vector.broadcast %cst_32 : f32 to vector<8x1xf32>
    %59 = arith.addf %55, %58 : vector<8x1xf32>
    %60 = math.rsqrt %59 : vector<8x1xf32>
    %61 = vector.broadcast %60 : vector<8x1xf32> to vector<8x32xf32>
    %62 = arith.mulf %57, %61 : vector<8x32xf32>
    %63 = vector.broadcast %40 : vector<1x32xf32> to vector<8x32xf32>
    %64 = arith.mulf %62, %63 : vector<8x32xf32>
    %65 = vector.broadcast %42 : vector<1x32xf32> to vector<8x32xf32>
    %66 = arith.addf %64, %65 : vector<8x32xf32>
    %c0_33 = arith.constant 0 : index
    %c0_34 = arith.constant 0 : index
    %c0_35 = arith.constant 0 : index
    %67 = vector.load %arg9[%c0_33, %c0_34, %c0_35] : memref<2x32x128xf32, #tpu.memory_space<vmem>>, vector<1x32x128xf32>
    %68 = vector.shape_cast %67 : vector<1x32x128xf32> to vector<32x128xf32>
    %cst_36 = arith.constant dense<0.000000e+00> : vector<8x128xf32>
    %69 = tpu.matmul %66, %68, %cst_36 {dimension_numbers = #tpu.dot_dimension_numbers<[1], [0], [0], [1], [0, 0, 1, 1], [], []>} : vector<8x32xf32>, vector<32x128xf32>, vector<8x128xf32> -> vector<8x128xf32>
    %c0_37 = arith.constant 0 : index
    %c0_38 = arith.constant 0 : index
    %c0_39 = arith.constant 0 : index
    %70 = vector.load %arg10[%c0_37, %c0_38, %c0_39] : memref<2x1x128xf32, #tpu.memory_space<vmem>>, vector<1x1x128xf32>
    %71 = vector.shape_cast %70 : vector<1x1x128xf32> to vector<1x128xf32>
    %72 = vector.broadcast %71 : vector<1x128xf32> to vector<8x128xf32>
    %73 = arith.addf %69, %72 : vector<8x128xf32>
    %cst_40 = arith.constant 5.000000e-01 : f32
    %74 = vector.broadcast %cst_40 : f32 to vector<8x128xf32>
    %75 = arith.mulf %74, %73 : vector<8x128xf32>
    %cst_41 = arith.constant 4.471500e-02 : f32
    %76 = vector.broadcast %cst_41 : f32 to vector<8x128xf32>
    %77 = arith.mulf %76, %73 : vector<8x128xf32>
    %78 = arith.mulf %77, %73 : vector<8x128xf32>
    %79 = arith.mulf %78, %73 : vector<8x128xf32>
    %80 = arith.addf %73, %79 : vector<8x128xf32>
    %cst_42 = arith.constant 0.797884583 : f32
    %81 = vector.broadcast %cst_42 : f32 to vector<8x128xf32>
    %82 = arith.mulf %81, %80 : vector<8x128xf32>
    %83 = math.tanh %82 : vector<8x128xf32>
    %cst_43 = arith.constant 1.000000e+00 : f32
    %84 = vector.broadcast %cst_43 : f32 to vector<8x128xf32>
    %85 = arith.addf %84, %83 : vector<8x128xf32>
    %86 = arith.mulf %75, %85 : vector<8x128xf32>
    %c0_44 = arith.constant 0 : index
    %c0_45 = arith.constant 0 : index
    %c0_46 = arith.constant 0 : index
    %87 = vector.load %arg11[%c0_44, %c0_45, %c0_46] : memref<2x128x32xf32, #tpu.memory_space<vmem>>, vector<1x128x32xf32>
    %88 = vector.shape_cast %87 : vector<1x128x32xf32> to vector<128x32xf32>
    %cst_47 = arith.constant dense<0.000000e+00> : vector<8x32xf32>
    %89 = tpu.matmul %86, %88, %cst_47 {dimension_numbers = #tpu.dot_dimension_numbers<[1], [0], [0], [1], [0, 0, 1, 1], [], []>} : vector<8x128xf32>, vector<128x32xf32>, vector<8x32xf32> -> vector<8x32xf32>
    %c0_48 = arith.constant 0 : index
    %c0_49 = arith.constant 0 : index
    %c0_50 = arith.constant 0 : index
    %90 = vector.load %arg12[%c0_48, %c0_49, %c0_50] : memref<2x1x32xf32, #tpu.memory_space<vmem>>, vector<1x1x32xf32>
    %91 = vector.shape_cast %90 : vector<1x1x32xf32> to vector<1x32xf32>
    %92 = vector.broadcast %91 : vector<1x32xf32> to vector<8x32xf32>
    %93 = arith.addf %89, %92 : vector<8x32xf32>
    %94 = arith.addf %38, %93 : vector<8x32xf32>
    %c1 = arith.constant 1 : index
    %c0_51 = arith.constant 0 : index
    %c0_52 = arith.constant 0 : index
    %95 = vector.load %arg3[%c1, %c0_51, %c0_52] : memref<2x1x32xf32, #tpu.memory_space<vmem>>, vector<1x1x32xf32>
    %96 = vector.shape_cast %95 : vector<1x1x32xf32> to vector<1x32xf32>
    %c1_53 = arith.constant 1 : index
    %c0_54 = arith.constant 0 : index
    %c0_55 = arith.constant 0 : index
    %97 = vector.load %arg4[%c1_53, %c0_54, %c0_55] : memref<2x1x32xf32, #tpu.memory_space<vmem>>, vector<1x1x32xf32>
    %98 = vector.shape_cast %97 : vector<1x1x32xf32> to vector<1x32xf32>
    %cst_56 = arith.constant dense<0.000000e+00> : vector<8xf32>
    %99 = vector.multi_reduction <add>, %94, %cst_56 [1] : vector<8x32xf32> to vector<8xf32>
    %100 = vector.shape_cast %99 : vector<8xf32> to vector<8x1xf32>
    %cst_57 = arith.constant 3.200000e+01 : f32
    %101 = vector.broadcast %cst_57 : f32 to vector<8x1xf32>
    %102 = arith.divf %100, %101 : vector<8x1xf32>
    %103 = arith.mulf %94, %94 : vector<8x32xf32>
    %cst_58 = arith.constant dense<0.000000e+00> : vector<8xf32>
    %104 = vector.multi_reduction <add>, %103, %cst_58 [1] : vector<8x32xf32> to vector<8xf32>
    %105 = vector.shape_cast %104 : vector<8xf32> to vector<8x1xf32>
    %cst_59 = arith.constant 3.200000e+01 : f32
    %106 = vector.broadcast %cst_59 : f32 to vector<8x1xf32>
    %107 = arith.divf %105, %106 : vector<8x1xf32>
    %108 = arith.mulf %102, %102 : vector<8x1xf32>
    %109 = arith.subf %107, %108 : vector<8x1xf32>
    %cst_60 = arith.constant 0.000000e+00 : f32
    %110 = vector.broadcast %cst_60 : f32 to vector<8x1xf32>
    %111 = arith.maximumf %109, %110 : vector<8x1xf32>
    %112 = vector.broadcast %102 : vector<8x1xf32> to vector<8x32xf32>
    %113 = arith.subf %94, %112 : vector<8x32xf32>
    %cst_61 = arith.constant 9.99999974E-6 : f32
    %114 = vector.broadcast %cst_61 : f32 to vector<8x1xf32>
    %115 = arith.addf %111, %114 : vector<8x1xf32>
    %116 = math.rsqrt %115 : vector<8x1xf32>
    %117 = vector.broadcast %116 : vector<8x1xf32> to vector<8x32xf32>
    %118 = arith.mulf %113, %117 : vector<8x32xf32>
    %119 = vector.broadcast %96 : vector<1x32xf32> to vector<8x32xf32>
    %120 = arith.mulf %118, %119 : vector<8x32xf32>
    %121 = vector.broadcast %98 : vector<1x32xf32> to vector<8x32xf32>
    %122 = arith.addf %120, %121 : vector<8x32xf32>
    %c1_62 = arith.constant 1 : index
    %c0_63 = arith.constant 0 : index
    %c0_64 = arith.constant 0 : index
    %123 = vector.load %arg5[%c1_62, %c0_63, %c0_64] : memref<2x32x32xf32, #tpu.memory_space<vmem>>, vector<1x32x32xf32>
    %124 = vector.shape_cast %123 : vector<1x32x32xf32> to vector<32x32xf32>
    %cst_65 = arith.constant dense<0.000000e+00> : vector<8x32xf32>
    %125 = tpu.matmul %122, %124, %cst_65 {dimension_numbers = #tpu.dot_dimension_numbers<[1], [0], [0], [1], [0, 0, 1, 1], [], []>} : vector<8x32xf32>, vector<32x32xf32>, vector<8x32xf32> -> vector<8x32xf32>
    %c1_66 = arith.constant 1 : index
    %c0_67 = arith.constant 0 : index
    %c0_68 = arith.constant 0 : index
    %126 = vector.load %arg6[%c1_66, %c0_67, %c0_68] : memref<2x1x32xf32, #tpu.memory_space<vmem>>, vector<1x1x32xf32>
    %127 = vector.shape_cast %126 : vector<1x1x32xf32> to vector<1x32xf32>
    %128 = vector.broadcast %127 : vector<1x32xf32> to vector<8x32xf32>
    %129 = arith.addf %125, %128 : vector<8x32xf32>
    %130 = arith.addf %94, %129 : vector<8x32xf32>
    %c1_69 = arith.constant 1 : index
    %c0_70 = arith.constant 0 : index
    %c0_71 = arith.constant 0 : index
    %131 = vector.load %arg7[%c1_69, %c0_70, %c0_71] : memref<2x1x32xf32, #tpu.memory_space<vmem>>, vector<1x1x32xf32>
    %132 = vector.shape_cast %131 : vector<1x1x32xf32> to vector<1x32xf32>
    %c1_72 = arith.constant 1 : index
    %c0_73 = arith.constant 0 : index
    %c0_74 = arith.constant 0 : index
    %133 = vector.load %arg8[%c1_72, %c0_73, %c0_74] : memref<2x1x32xf32, #tpu.memory_space<vmem>>, vector<1x1x32xf32>
    %134 = vector.shape_cast %133 : vector<1x1x32xf32> to vector<1x32xf32>
    %cst_75 = arith.constant dense<0.000000e+00> : vector<8xf32>
    %135 = vector.multi_reduction <add>, %130, %cst_75 [1] : vector<8x32xf32> to vector<8xf32>
    %136 = vector.shape_cast %135 : vector<8xf32> to vector<8x1xf32>
    %cst_76 = arith.constant 3.200000e+01 : f32
    %137 = vector.broadcast %cst_76 : f32 to vector<8x1xf32>
    %138 = arith.divf %136, %137 : vector<8x1xf32>
    %139 = arith.mulf %130, %130 : vector<8x32xf32>
    %cst_77 = arith.constant dense<0.000000e+00> : vector<8xf32>
    %140 = vector.multi_reduction <add>, %139, %cst_77 [1] : vector<8x32xf32> to vector<8xf32>
    %141 = vector.shape_cast %140 : vector<8xf32> to vector<8x1xf32>
    %cst_78 = arith.constant 3.200000e+01 : f32
    %142 = vector.broadcast %cst_78 : f32 to vector<8x1xf32>
    %143 = arith.divf %141, %142 : vector<8x1xf32>
    %144 = arith.mulf %138, %138 : vector<8x1xf32>
    %145 = arith.subf %143, %144 : vector<8x1xf32>
    %cst_79 = arith.constant 0.000000e+00 : f32
    %146 = vector.broadcast %cst_79 : f32 to vector<8x1xf32>
    %147 = arith.maximumf %145, %146 : vector<8x1xf32>
    %148 = vector.broadcast %138 : vector<8x1xf32> to vector<8x32xf32>
    %149 = arith.subf %130, %148 : vector<8x32xf32>
    %cst_80 = arith.constant 9.99999974E-6 : f32
    %150 = vector.broadcast %cst_80 : f32 to vector<8x1xf32>
    %151 = arith.addf %147, %150 : vector<8x1xf32>
    %152 = math.rsqrt %151 : vector<8x1xf32>
    %153 = vector.broadcast %152 : vector<8x1xf32> to vector<8x32xf32>
    %154 = arith.mulf %149, %153 : vector<8x32xf32>
    %155 = vector.broadcast %132 : vector<1x32xf32> to vector<8x32xf32>
    %156 = arith.mulf %154, %155 : vector<8x32xf32>
    %157 = vector.broadcast %134 : vector<1x32xf32> to vector<8x32xf32>
    %158 = arith.addf %156, %157 : vector<8x32xf32>
    %c1_81 = arith.constant 1 : index
    %c0_82 = arith.constant 0 : index
    %c0_83 = arith.constant 0 : index
    %159 = vector.load %arg9[%c1_81, %c0_82, %c0_83] : memref<2x32x128xf32, #tpu.memory_space<vmem>>, vector<1x32x128xf32>
    %160 = vector.shape_cast %159 : vector<1x32x128xf32> to vector<32x128xf32>
    %cst_84 = arith.constant dense<0.000000e+00> : vector<8x128xf32>
    %161 = tpu.matmul %158, %160, %cst_84 {dimension_numbers = #tpu.dot_dimension_numbers<[1], [0], [0], [1], [0, 0, 1, 1], [], []>} : vector<8x32xf32>, vector<32x128xf32>, vector<8x128xf32> -> vector<8x128xf32>
    %c1_85 = arith.constant 1 : index
    %c0_86 = arith.constant 0 : index
    %c0_87 = arith.constant 0 : index
    %162 = vector.load %arg10[%c1_85, %c0_86, %c0_87] : memref<2x1x128xf32, #tpu.memory_space<vmem>>, vector<1x1x128xf32>
    %163 = vector.shape_cast %162 : vector<1x1x128xf32> to vector<1x128xf32>
    %164 = vector.broadcast %163 : vector<1x128xf32> to vector<8x128xf32>
    %165 = arith.addf %161, %164 : vector<8x128xf32>
    %cst_88 = arith.constant 5.000000e-01 : f32
    %166 = vector.broadcast %cst_88 : f32 to vector<8x128xf32>
    %167 = arith.mulf %166, %165 : vector<8x128xf32>
    %cst_89 = arith.constant 4.471500e-02 : f32
    %168 = vector.broadcast %cst_89 : f32 to vector<8x128xf32>
    %169 = arith.mulf %168, %165 : vector<8x128xf32>
    %170 = arith.mulf %169, %165 : vector<8x128xf32>
    %171 = arith.mulf %170, %165 : vector<8x128xf32>
    %172 = arith.addf %165, %171 : vector<8x128xf32>
    %cst_90 = arith.constant 0.797884583 : f32
    %173 = vector.broadcast %cst_90 : f32 to vector<8x128xf32>
    %174 = arith.mulf %173, %172 : vector<8x128xf32>
    %175 = math.tanh %174 : vector<8x128xf32>
    %cst_91 = arith.constant 1.000000e+00 : f32
    %176 = vector.broadcast %cst_91 : f32 to vector<8x128xf32>
    %177 = arith.addf %176, %175 : vector<8x128xf32>
    %178 = arith.mulf %167, %177 : vector<8x128xf32>
    %c1_92 = arith.constant 1 : index
    %c0_93 = arith.constant 0 : index
    %c0_94 = arith.constant 0 : index
    %179 = vector.load %arg11[%c1_92, %c0_93, %c0_94] : memref<2x128x32xf32, #tpu.memory_space<vmem>>, vector<1x128x32xf32>
    %180 = vector.shape_cast %179 : vector<1x128x32xf32> to vector<128x32xf32>
    %cst_95 = arith.constant dense<0.000000e+00> : vector<8x32xf32>
    %181 = tpu.matmul %178, %180, %cst_95 {dimension_numbers = #tpu.dot_dimension_numbers<[1], [0], [0], [1], [0, 0, 1, 1], [], []>} : vector<8x128xf32>, vector<128x32xf32>, vector<8x32xf32> -> vector<8x32xf32>
    %c1_96 = arith.constant 1 : index
    %c0_97 = arith.constant 0 : index
    %c0_98 = arith.constant 0 : index
    %182 = vector.load %arg12[%c1_96, %c0_97, %c0_98] : memref<2x1x32xf32, #tpu.memory_space<vmem>>, vector<1x1x32xf32>
    %183 = vector.shape_cast %182 : vector<1x1x32xf32> to vector<1x32xf32>
    %184 = vector.broadcast %183 : vector<1x32xf32> to vector<8x32xf32>
    %185 = arith.addf %181, %184 : vector<8x32xf32>
    %186 = arith.addf %130, %185 : vector<8x32xf32>
    %c0_99 = arith.constant 0 : index
    %c0_100 = arith.constant 0 : index
    %187 = vector.load %arg13[%c0_99, %c0_100] : memref<8x32xf32, #tpu.memory_space<vmem>>, vector<8x32xf32>
    tpu.vector_store %arg13[%c0_99, %c0_100], %186 {strides = array<i32>} : memref<8x32xf32, #tpu.memory_space<vmem>>, vector<8x32xf32>,
    return
  }
  func.func @transform_0(%arg0: i32) -> (i32, i32) {
    %c0_i32 = arith.constant 0 : i32
    %c0_i32_0 = arith.constant 0 : i32
    return %arg0, %c0_i32 : i32, i32
  }
  func.func @transform_1(%arg0: i32) -> (i32, i32) {
    %c0_i32 = arith.constant 0 : i32
    %c0_i32_0 = arith.constant 0 : i32
    return %arg0, %c0_i32 : i32, i32
  }
  func.func @transform_2(%arg0: i32) -> (i32, i32, i32) {
    %c0_i32 = arith.constant 0 : i32
    %c0_i32_0 = arith.constant 0 : i32
    %c0_i32_1 = arith.constant 0 : i32
    %c0_i32_2 = arith.constant 0 : i32
    return %c0_i32, %c0_i32_0, %c0_i32_1 : i32, i32, i32
  }
  func.func @transform_3(%arg0: i32) -> (i32, i32, i32) {
    %c0_i32 = arith.constant 0 : i32
    %c0_i32_0 = arith.constant 0 : i32
    %c0_i32_1 = arith.constant 0 : i32
    %c0_i32_2 = arith.constant 0 : i32
    return %c0_i32, %c0_i32_0, %c0_i32_1 : i32, i32, i32
  }
  func.func @transform_4(%arg0: i32) -> (i32, i32, i32) {
    %c0_i32 = arith.constant 0 : i32
    %c0_i32_0 = arith.constant 0 : i32
    %c0_i32_1 = arith.constant 0 : i32
    %c0_i32_2 = arith.constant 0 : i32
    return %c0_i32, %c0_i32_0, %c0_i32_1 : i32, i32, i32
  }
  func.func @transform_5(%arg0: i32) -> (i32, i32, i32) {
    %c0_i32 = arith.constant 0 : i32
    %c0_i32_0 = arith.constant 0 : i32
    %c0_i32_1 = arith.constant 0 : i32
    %c0_i32_2 = arith.constant 0 : i32
    return %c0_i32, %c0_i32_0, %c0_i32_1 : i32, i32, i32
  }
  func.func @transform_6(%arg0: i32) -> (i32, i32, i32) {
    %c0_i32 = arith.constant 0 : i32
    %c0_i32_0 = arith.constant 0 : i32
    %c0_i32_1 = arith.constant 0 : i32
    %c0_i32_2 = arith.constant 0 : i32
    return %c0_i32, %c0_i32_0, %c0_i32_1 : i32, i32, i32
  }
  func.func @transform_7(%arg0: i32) -> (i32, i32, i32) {
    %c0_i32 = arith.constant 0 : i32
    %c0_i32_0 = arith.constant 0 : i32
    %c0_i32_1 = arith.constant 0 : i32
    %c0_i32_2 = arith.constant 0 : i32
    return %c0_i32, %c0_i32_0, %c0_i32_1 : i32, i32, i32
  }
  func.func @transform_8(%arg0: i32) -> (i32, i32, i32) {
    %c0_i32 = arith.constant 0 : i32
    %c0_i32_0 = arith.constant 0 : i32
    %c0_i32_1 = arith.constant 0 : i32
    %c0_i32_2 = arith.constant 0 : i32
    return %c0_i32, %c0_i32_0, %c0_i32_1 : i32, i32, i32
  }
  func.func @transform_9(%arg0: i32) -> (i32, i32, i32) {
    %c0_i32 = arith.constant 0 : i32
    %c0_i32_0 = arith.constant 0 : i32
    %c0_i32_1 = arith.constant 0 : i32
    %c0_i32_2 = arith.constant 0 : i32
    return %c0_i32, %c0_i32_0, %c0_i32_1 : i32, i32, i32
  }
  func.func @transform_10(%arg0: i32) -> (i32, i32, i32) {
    %c0_i32 = arith.constant 0 : i32
    %c0_i32_0 = arith.constant 0 : i32
    %c0_i32_1 = arith.constant 0 : i32
    %c0_i32_2 = arith.constant 0 : i32
    return %c0_i32, %c0_i32_0, %c0_i32_1 : i32, i32, i32
  }
  func.func @transform_11(%arg0: i32) -> (i32, i32, i32) {
    %c0_i32 = arith.constant 0 : i32
    %c0_i32_0 = arith.constant 0 : i32
    %c0_i32_1 = arith.constant 0 : i32
    %c0_i32_2 = arith.constant 0 : i32
    return %c0_i32, %c0_i32_0, %c0_i32_1 : i32, i32, i32
  }
  func.func @transform_12(%arg0: i32) -> (i32, i32) {
    %c0_i32 = arith.constant 0 : i32
    %c0_i32_0 = arith.constant 0 : i32
    return %arg0, %c0_i32 : i32, i32
  }
}

</mosaic_0001>

<bundles_post_ra>
// kernel: tpu_custom_call.1
= control target key start
LH: loop header
LB: loop body
LE: loop exit
PB: predicated region body
PF: predicated region fallthrough
CT: control target
= control target key end

     0   :  { %17 = vsyncpa [#allocation3], 0  ;;  %s2040_s0 = inlined_call_operand.vmem [shape: f32[16,32], index: 0, kind: input, shape index: {}]   ;;  %s2041_s1 = inlined_call_operand.vmem [shape: f32[2000,32], index: 1, kind: input, shape index: {}]   ;;  %s2042_s2 = inlined_call_operand.vmem [shape: f32[2,1,32], index: 2, kind: input, shape index: {}]   ;;  %s2043_s3 = inlined_call_operand.vmem [shape: f32[2,1,32], index: 3, kind: input, shape index: {}]   ;;  %s2044_s4 = inlined_call_operand.vmem [shape: f32[2,32,32], index: 4, kind: input, shape index: {}]   ;;  %s2045_s5 = inlined_call_operand.vmem [shape: f32[2,1,32], index: 5, kind: input, shape index: {}]   ;;  %s2046_s6 = inlined_call_operand.vmem [shape: f32[2,1,32], index: 6, kind: input, shape index: {}]   ;;  %s2047_s7 = inlined_call_operand.vmem [shape: f32[2,1,32], index: 7, kind: input, shape index: {}]   ;;  %s2048_s8 = inlined_call_operand.vmem [shape: f32[2,32,128], index: 8, kind: input, shape index: {}]   ;;  %s2049_s9 = inlined_call_operand.vmem [shape: f32[2,1,128], index: 9, kind: input, shape index: {}]   ;;  %s2050_s10 = inlined_call_operand.vmem [shape: f32[2,128,32], index: 10, kind: input, shape index: {}]   ;;  %s2051_s11 = inlined_call_operand.vmem [shape: f32[2,1,32], index: 11, kind: input, shape index: {}]   ;;  %s2052_s12 = inlined_call_operand.hbm [shape: f32[16,32], index: 12, kind: output, shape index: {}]  }
   0x1   :  { %19 = vsyncpa [#allocation3 + $0x1], 0  ;;  %s1686_s21 = smov 0   ;;  %s1688_s22 = smov 0  }
   0x2   :  { %s1690_s23 = smov 0   ;;  %s1692_s24 = smov 0  }
   0x3 LB: > { %2054 = sst [smem:[#allocation5_spill]] %s1611_s23  ;;  %s1707_s25 = sadd.s32 4294967295, %s1615_s24   ;;  %s1615_s24 = sphi %s1692_s24, %s2062_s24   ;;  %s1611_s23 = sphi %s1690_s23, %s2059_s23   ;;  %s1607_s22 = sphi %s1688_s22, %s2061_s22   ;;  %s1603_s21 = sphi %s1686_s21, %s2060_s21  }
   0x4   : > { %s1199_s26 = sadd.s32 4294967294, %s1615_s24   ;;  %s1711_s27 = sadd.s32 1, %s1615_s24  }
   0x5   : > { %s294_s28 = sadd.s32 1, %s1611_s23  ;;  %s291_s29 = ssub.s32 %s1615_s24, %s1711_s27 }
   0x6   : > { %p304_p0 = scmp.ne.s32.totalorder %s1611_s23, %s1607_s22  ;;  %p292_p1 = scmp.eq.s32.totalorder %s291_s29, 0 }
   0x7   : > { %p305_p2 = scmp.eq.s32.totalorder %s1707_s25, 1  ;;  %p310_p3 = scmp.ne.s32.totalorder %s1607_s22, %s1603_s21 }
   0x8   : > { %p311_p4 = scmp.eq.s32.totalorder %s1199_s26, 1  ;;  %p1202_p7 = scmp.ge.s32.totalorder %s1615_s24, 1 }
   0x9   : > { %s1722_s30 = scalar_select %p292_p1, %s1611_s23, %s294_s28  }
   0xa   : > { %p1724_p5 = por %p305_p2, %p304_p0  ;;  %p1728_p6 = por %p311_p4, %p310_p3 }
   0xb   : > { %2055 = sst [smem:[#allocation6_spill]] %s1722_s30  ;;  %p373_p8 = scmp.lt.s32.totalorder %s1615_s24, 3 }
   0xd   : > { %p374_p9 = pnand %p1202_p7, %p373_p8 }
   0xe   : > { %p418_p10 = scmp.lt.s32.totalorder (!%p374_p9), %s1707_s25, 1  ;;  %p422_p11 = scmp.lt.s32.totalorder (!%p374_p9), %s1707_s25, 249  ;;  %vm431_vm0 = vcmask (!%p374_p9), 261120   ;;  %v463_v6 = vld [vmem:[%s2044_s4] sm:$0xff] (!%p374_p9)  ;;  %v464_v7 = vld [vmem:[%s2044_s4 + $0x8] sm:$0xff] (!%p374_p9)  ;;  %v465_v8 = vld [vmem:[%s2044_s4 + $0x10] sm:$0xff] (!%p374_p9) }
   0xf   : > { %377 = sbr.rel (%p374_p9) target bundleno = 2070 (0x816), region = 68  ;;  %v1617_v9 = vmov (!%p374_p9), 0.0|0.0   ;;  %v1428_v10 = vpack.c.bf16 (!%p374_p9), %v464_v7, %v463_v6  ;;  %v466_v11 = vld [vmem:[%s2044_s4 + $0x18] sm:$0xff] (!%p374_p9)  ;;  %vm1618_vm1 = vmmov (!%p374_p9), 0   ;;  %v1619_v12 = vmov (!%p374_p9), 0.0   ;;  %v580_v37 = vld [vmem:[%s2048_s8] sm:$0xff] (!%p374_p9) }
  0x10   : > { %1427 = vmatprep.subr.bf16.mxu0 (!%p374_p9), %v1617_v9  ;;  %1321 = vmatprep.mubr.msk.f32.mxu0 (!%p374_p9), %vm1618_vm1, %v1619_v12  ;;  %v1431_v13 = vpack.c.bf16 (!%p374_p9), %v466_v11, %v465_v8  ;;  %v1206_v24 = vld [vmem:[%s2042_s2] ss:$0 sm:$0xff] (!%p374_p9)  ;;  %v581_v38 = vld [vmem:[%s2048_s8 + $0x8] sm:$0xff] (!%p374_p9)  ;;  %v582_v40 = vld [vmem:[%s2048_s8 + $0x10] sm:$0xff] (!%p374_p9)  ;;  %s1256_s19 = sshll.u32 (!%p374_p9), %s1707_s25, 7 }
  0x11   : > { %1463 = vmatprep.subr.bf16.mxu1 (!%p374_p9), %v1617_v9  ;;  %1378 = vmatprep.mubr.msk.f32.mxu1 (!%p374_p9), %vm1618_vm1, %v1619_v12  ;;  %v1207_v26 = vld [vmem:[%s2043_s3] ss:$0 sm:$0xff] (!%p374_p9)  ;;  %v1434_v39 = vpack.c.bf16 (!%p374_p9), %v581_v38, %v580_v37  ;;  %v583_v41 = vld [vmem:[%s2048_s8 + $0x18] sm:$0xff] (!%p374_p9)  ;;  %v674_v56 = vld [vmem:[%s2050_s10 + $0x8] sm:$0xff] (!%p374_p9)  ;;  %s1997_s28 = scalar_lea.hbm (!%p374_p9), %s2052_s12, %s1256_s19 }
  0x12   : > { %1429 = vmatpush3.bf16.msra.mxu0 (!%p374_p9), %v1428_v10  ;;  %v1208_v29 = vld [vmem:[%s2045_s5] ss:$0 sm:$0xff] (!%p374_p9)  ;;  %v1437_v42 = vpack.c.bf16 (!%p374_p9), %v583_v41, %v582_v40  ;;  %v675_v61 = vld [vmem:[%s2050_s10 + $0x10] sm:$0xff] (!%p374_p9)  ;;  %v676_v62 = vld [vmem:[%s2050_s10 + $0x18] sm:$0xff] (!%p374_p9) }
  0x13   : > { %1430 = vmatprep.subr.bf16.mxu0 (!%p374_p9), %v1617_v9  ;;  %v1210_v53 = vld [vmem:[%s2046_s6] ss:$0 sm:$0xff] (!%p374_p9)  ;;  %v1443_v63 = vpack.c.bf16 (!%p374_p9), %v676_v62, %v675_v61  ;;  %v682_v7 = vld [vmem:[%s2050_s10 + $0x48] sm:$0xff] (!%p374_p9)  ;;  %v683_v10 = vld [vmem:[%s2050_s10 + $0x50] sm:$0xff] (!%p374_p9) }
  0x14   : > { %v673_v55 = vld [vmem:[%s2050_s10] sm:$0xff] (!%p374_p9)  ;;  %v684_v11 = vld [vmem:[%s2050_s10 + $0x58] sm:$0xff] (!%p374_p9) }
  0x15   : > { %v1211_v57 = vld [vmem:[%s2047_s7] ss:$0 sm:$0xff] (!%p374_p9)  ;;  %v1440_v59 = vpack.c.bf16 (!%p374_p9), %v674_v56, %v673_v55  ;;  %v1224_v62 = vld [vmem:[%s2045_s5 + $0x1] ss:$0 sm:$0xff] (!%p374_p9) }
  0x16   : > { %s419_s15 = scalar_select %p418_p10, %s1707_s25, 1  ;;  %1432 = vmatpush3.bf16.msra.mxu0 %v1431_v13  ;;  %v681_v6 = vld [vmem:[%s2050_s10 + $0x40] sm:$0xff]  ;;  %v1455_v13 = vpack.c.bf16 %v684_v11, %v683_v10  ;;  %v1232_v10 = vld [vmem:[%s2048_s8 + $0x30] sm:$0xff]  ;;  %v1233_v11 = vld [vmem:[%s2048_s8 + $0x38] sm:$0xff] }
  0x17   : > { %s423_s16 = scalar_select %p422_p11, %s1707_s25, 249  ;;  %1433 = vmatprep.subr.bf16.mxu0 %v1617_v9  ;;  %v1452_v8 = vpack.c.bf16 %v682_v7, %v681_v6  ;;  %v1230_v6 = vld [vmem:[%s2048_s8 + $0x20] sm:$0xff]  ;;  %v1231_v7 = vld [vmem:[%s2048_s8 + $0x28] sm:$0xff] }
  0x18   : > { %s1204_s17 = sshll.u32 %s419_s15, 3  ;;  %s415_s15 = sand.u32 1, %s1607_s22  }
  0x19   : > { %s421_s20 = scalar_lea.vmem %s2040_s0, %s1204_s17  ;;  %s1205_s26 = sshll.u32 %s423_s16, 3 }
  0x1a   : > { %s425_s30 = scalar_lea.vmem %s2041_s1, %s1205_s26  ;;  %v426_v0 = vld [vmem:[%s421_s20] sm:$0xff]  ;;  %s1203_s16 = sshll.u32 %s415_s15, 3 }
  0x1b   : > { %v427_v1 = vld [vmem:[%s425_s30] sm:$0xff]  ;;  %s417_s30 = scalar_lea.vmem [#allocation2], %s1203_s16  ;;  %s1115_s29 = scalar_lea.sflag [#allocation3], %s415_s15 }
  0x1c   : > { %v428_v2 = vadd.f32 %v427_v1, %v426_v0  ;;  %v677_v0 = vld [vmem:[%s2050_s10 + $0x20] sm:$0xff]  ;;  %v678_v1 = vld [vmem:[%s2050_s10 + $0x28] sm:$0xff]  ;;  %s1128_s20 = sshll.u32 %s417_s30, 4  ;;  %s1620_s16 = smov [#allocation2]   ;;  %s1999_s20 = int_to_ptr.vmem [resolvable:$true] %s1128_s20 }
  0x1d   : > { %s1553_s25 = scalar_lea.vmem %s1999_s20, 128  ;;  %s1557_s17 = sshll.u32 %s1620_s16, 4  ;;  %s1558_s17 = int_to_ptr.vmem [resolvable:$false] %s1557_s17 }
  0x1e   : > { %v432_v3 = vsel %vm431_vm0, %v428_v2, 0.0  ;;  %v437_v4 = vmul.f32 %v428_v2, %v428_v2  ;;  %p1554_p12 = scmp.ne.s32.totalorder %s1999_s20, %s1553_s25  ;;  %s1559_s18 = scalar_lea.vmem %s1558_s17, 256 }
  0x1f   : > { %433 = vadd.xlane.f32.xlu0 %v432_v3  ;;  %v679_v3 = vld [vmem:[%s2050_s10 + $0x30] sm:$0xff]  ;;  %p1560_p1 = scmp.lt.s32.totalorder %s1999_s20, %s1558_s17  ;;  %p1561_p2 = scmp.lt.s32.totalorder %s1559_s18, %s1553_s25 }
  0x20   : > { %v438_v5 = vsel %vm431_vm0, %v437_v4, 0.0  ;;  %v680_v4 = vld [vmem:[%s2050_s10 + $0x38] sm:$0xff]  ;;  %p1555_p13 = pnand %p1554_p12, %p1724_p5 }
  0x21   : > { %p1562_p3 = por %p1561_p2, %p1560_p1 }
  0x22   : > { %p1556_p0 = pneg %p1555_p13 }
  0x23   : > { %439 = vadd.xlane.f32.xlu0 %v438_v5  ;;  %v1449_v5 = vpack.c.bf16 %v680_v4, %v679_v3 }
  0x24   : > { %p1563_p4 = pnand %p1562_p3, %p1556_p0 }
  0xac   : > { %v434_v14 = vpop.xlane.xlu0 %433 }
  0xad   : > { %v436_v15 = vmul.f32 0.03125, %v434_v14  ;;  %v685_v14 = vld [vmem:[%s2050_s10 + $0x60] sm:$0xff] }
  0xaf   : > { %v442_v17 = vmul.f32 %v436_v15, %v436_v15  ;;  %v445_v22 = vsub.f32 %v428_v2, %v436_v15  ;;  %v686_v15 = vld [vmem:[%s2050_s10 + $0x68] sm:$0xff] }
  0xb0   : > { %v440_v16 = vpop.xlane.xlu0 %439 }
  0xb1   : > { %v441_v18 = vmul.f32 0.03125, %v440_v16  ;;  %v1458_v16 = vpack.c.bf16 %v686_v15, %v685_v14 }
  0xb3   : > { %v443_v19 = vsub.f32 %v441_v18, %v442_v17  ;;  %v687_v17 = vld [vmem:[%s2050_s10 + $0x70] sm:$0xff]  ;;  %v688_v18 = vld [vmem:[%s2050_s10 + $0x78] sm:$0xff] }
  0xb5   : > { %v444_v20 = vmax.f32 %v443_v19, 0.0  ;;  %v1461_v19 = vpack.c.bf16 %v688_v18, %v687_v17 }
  0xb7   : > { %v446_v21 = vadd.f32 1e-05, %v444_v20  ;;  %v1212_v20 = vld [vmem:[%s2049_s9] ss:$0 sm:$0xff] }
  0xb9   : > { %1541 = vrsqrt.f32 %v446_v21 }
  0xc3   : > { %v1542_v23 = vpop.eup %1541 }
  0xc4   : > { %v448_v25 = vmul.f32 %v1542_v23, %v445_v22 }
  0xc6   : > { %v455_v27 = vmul.f32 %v1206_v24, %v448_v25 }
  0xc8   : > { %v462_v28 = vadd.f32 %v1207_v26, %v455_v27 }
  0xca   : > { %1322 = vmatmul.mubr.msk.f32.vlgmr.msra.gmra.mrb[0].mxu0 %vm431_vm0, %v462_v28 }
  0xcb   : > { %1332 = vmatprep.mubr.msk.f32.mxu0 %vm1618_vm1, %v1619_v12  ;;  %1435 = vmatpush3.bf16.msra.mxu0 %v1434_v39 }
  0xcc   : > { %1436 = vmatprep.subr.bf16.mxu0 %v1617_v9 }
  0xcf   : > { %1438 = vmatpush3.bf16.msra.mxu0 %v1437_v42  ;;  %v1219_v42 = vld [vmem:[%s2044_s4 + $0x20] sm:$0xff] }
  0xd0   : > { %1439 = vmatprep.subr.bf16.mxu0 %v1617_v9 }
 0x19d   : > { %v543_v30 = vpop.f32.mrb[0].mxu0 }
 0x19e   : > { %v544_v31 = vadd.f32 %v1208_v29, %v543_v30  ;;  %v1323_v32 = vpop.f32.mrb[1].mxu0 }
 0x1a0   : > { %v1778_v33 = vadd.f32 %v544_v31, %v428_v2  ;;  %v1446_v2 = vpack.c.bf16 %v678_v1, %v677_v0 }
 0x1a2   : > { %v550_v34 = vsel %vm431_vm0, %v1778_v33, 0.0  ;;  %v554_v35 = vmul.f32 %v1778_v33, %v1778_v33 }
 0x1a3   : > { %551 = vadd.xlane.f32.xlu1 %v550_v34  ;;  %v1214_v34 = vld [vmem:[%s2051_s11] ss:$0 sm:$0xff] }
 0x1a4   : > { %v555_v36 = vsel %vm431_vm0, %v554_v35, 0.0 }
 0x1a7   : > { %556 = vadd.xlane.f32.xlu1 %v555_v36 }
 0x230   : > { %v552_v43 = vpop.xlane.xlu1 %551 }
 0x231   : > { %v553_v44 = vmul.f32 0.03125, %v552_v43  ;;  %v1220_v43 = vld [vmem:[%s2044_s4 + $0x28] sm:$0xff] }
 0x233   : > { %v559_v46 = vmul.f32 %v553_v44, %v553_v44  ;;  %v562_v51 = vsub.f32 %v1778_v33, %v553_v44  ;;  %v1221_v44 = vld [vmem:[%s2044_s4 + $0x30] sm:$0xff] }
 0x234   : > { %v557_v45 = vpop.xlane.xlu1 %556 }
 0x235   : > { %v558_v47 = vmul.f32 0.03125, %v557_v45  ;;  %v1222_v45 = vld [vmem:[%s2044_s4 + $0x38] sm:$0xff] }
 0x237   : > { %v560_v48 = vsub.f32 %v558_v47, %v559_v46  ;;  %v1467_v46 = vpack.c.bf16 %v1222_v45, %v1221_v44  ;;  %v1247_v44 = vld [vmem:[%s2050_s10 + $0xd0] sm:$0xff] }
 0x239   : > { %v561_v49 = vmax.f32 %v560_v48, 0.0 }
 0x23b   : > { %v563_v50 = vadd.f32 1e-05, %v561_v49 }
 0x23d   : > { %1543 = vrsqrt.f32 %v563_v50 }
 0x247   : > { %v1544_v52 = vpop.eup %1543 }
 0x248   : > { %v565_v54 = vmul.f32 %v1544_v52, %v562_v51 }
 0x24a   : > { %v572_v58 = vmul.f32 %v1210_v53, %v565_v54 }
 0x24c   : > { %v579_v60 = vadd.f32 %v1211_v57, %v572_v58  ;;  %v1217_v57 = vld [vmem:[%s2042_s2 + $0x1] ss:$0 sm:$0xff] }
 0x24e   : > { %1333 = vmatmul.mubr.msk.f32.vlgmr.msra.gmra.mrb[2].mxu0 %vm431_vm0, %v579_v60 }
 0x24f   : > { %1441 = vmatpush3.bf16.msra.mxu0 %v1440_v59  ;;  %1367 = vmatprep.mubr.msk.f32.mxu0 %vm1618_vm1, %v1619_v12  ;;  %v1218_v59 = vld [vmem:[%s2043_s3 + $0x1] ss:$0 sm:$0xff] }
 0x250   : > { %1442 = vmatprep.subr.bf16.mxu0 %v1617_v9 }
 0x253   : > { %1444 = vmatpush3.bf16.msra.mxu0 %v1443_v63 }
 0x254   : > { %1445 = vmatprep.subr.bf16.mxu0 %v1617_v9 }
 0x257   : > { %1447 = vmatpush3.bf16.msra.mxu0 %v1446_v2 }
 0x258   : > { %1448 = vmatprep.subr.bf16.mxu0 %v1617_v9 }
 0x25b   : > { %1450 = vmatpush3.bf16.msra.mxu0 %v1449_v5 }
 0x25c   : > { %1451 = vmatprep.subr.bf16.mxu0 %v1617_v9 }
 0x25f   : > { %1453 = vmatpush3.bf16.msra.mxu0 %v1452_v8  ;;  %v1470_v8 = vpack.c.bf16 %v1231_v7, %v1230_v6 }
 0x260   : > { %1454 = vmatprep.subr.bf16.mxu0 %v1617_v9 }
 0x263   : > { %1456 = vmatpush3.bf16.msra.mxu0 %v1455_v13  ;;  %v1473_v13 = vpack.c.bf16 %v1233_v11, %v1232_v10 }
 0x264   : > { %1457 = vmatprep.subr.bf16.mxu0 %v1617_v9 }
 0x267   : > { %1459 = vmatpush3.bf16.msra.mxu0 %v1458_v16 }
 0x268   : > { %1460 = vmatprep.subr.bf16.mxu0 %v1617_v9 }
 0x26b   : > { %1462 = vmatpush3.bf16.msra.mxu0 %v1461_v19 }
 0x321   : > { %v660_v21 = vpop.f32.mrb[2].mxu0 }
 0x322   : > { %v661_v22 = vadd.f32 %v1212_v20, %v660_v21  ;;  %v1334_v23 = vpop.f32.mrb[3].mxu0 }
 0x324   : > { %v665_v24 = vmul.f32 0.044715, %v661_v22  ;;  %v664_v30 = vmul.f32 0.5, %v661_v22 }
 0x326   : > { %v666_v25 = vmul.f32 %v665_v24, %v661_v22  ;;  %v1228_v24 = vld [vmem:[%s2046_s6 + $0x1] ss:$0 sm:$0xff] }
 0x328   : > { %v667_v26 = vmul.f32 %v666_v25, %v661_v22 }
 0x32a   : > { %v668_v27 = vadd.f32 %v667_v26, %v661_v22  ;;  %v1237_v26 = vld [vmem:[%s2050_s10 + $0x80] sm:$0xff] }
 0x32c   : > { %v669_v28 = vmul.f32 0.7978846, %v668_v27  ;;  %v1238_v27 = vld [vmem:[%s2050_s10 + $0x88] sm:$0xff] }
 0x32e   : > { %1545 = vtanh.f32 %v669_v28  ;;  %v1229_v28 = vld [vmem:[%s2047_s7 + $0x1] ss:$0 sm:$0xff] }
 0x338   : > { %v1546_v29 = vpop.eup %1545 }
 0x339   : > { %v671_v31 = vadd.f32 1.0, %v1546_v29 }
 0x33b   : > { %v672_v32 = vmul.f32 %v671_v31, %v664_v30  ;;  %v1476_v30 = vpack.c.bf16 %v1238_v27, %v1237_v26 }
 0x33d   : > { %1368 = vmatmul.mubr.f32.vlgmr.msra.gmra.mrb[4].mxu0 %v672_v32  ;;  %v1239_v32 = vld [vmem:[%s2050_s10 + $0x90] sm:$0xff] }
 0x410   : > { %v762_v35 = vpop.f32.mrb[4].mxu0 }
 0x411   : > { %v763_v36 = vadd.f32 %v1214_v34, %v762_v35  ;;  %v1369_v37 = vpop.f32.mrb[5].mxu0  ;;  %v1240_v34 = vld [vmem:[%s2050_s10 + $0x98] sm:$0xff] }
 0x412   : > { %v1479_v35 = vpack.c.bf16 %v1240_v34, %v1239_v32 }
 0x413   : > { %v766_v38 = vadd.f32 %v763_v36, %v1778_v33  ;;  %v1464_v33 = vpack.c.bf16 %v1220_v43, %v1219_v42  ;;  %v1241_v36 = vld [vmem:[%s2050_s10 + $0xa0] sm:$0xff]  ;;  %v1246_v42 = vld [vmem:[%s2050_s10 + $0xc8] sm:$0xff] }
 0x415   : > { %v771_v39 = vsel %vm431_vm0, %v766_v38, 0.0  ;;  %v775_v40 = vmul.f32 %v766_v38, %v766_v38  ;;  %1465 = vmatpush3.bf16.msra.mxu1 %v1464_v33  ;;  %v1248_v33 = vld [vmem:[%s2050_s10 + $0xd8] sm:$0xff] }
 0x416   : > { %772 = vadd.xlane.f32.xlu0 %v771_v39  ;;  %1466 = vmatprep.subr.bf16.mxu1 %v1617_v9  ;;  %v1244_v39 = vld [vmem:[%s2050_s10 + $0xb8] sm:$0xff]  ;;  %v1491_v45 = vpack.c.bf16 %v1248_v33, %v1247_v44 }
 0x417   : > { %v776_v41 = vsel %vm431_vm0, %v775_v40, 0.0 }
 0x418   : > { %777 = vadd.xlane.f32.xlu1 %v776_v41  ;;  %v1245_v41 = vld [vmem:[%s2050_s10 + $0xc0] sm:$0xff] }
 0x419   : > { %1468 = vmatpush3.bf16.msra.mxu1 %v1467_v46  ;;  %v1488_v43 = vpack.c.bf16 %v1246_v42, %v1245_v41  ;;  %v1249_v46 = vld [vmem:[%s2050_s10 + $0xe0] sm:$0xff] }
 0x41a   : > { %1469 = vmatprep.subr.bf16.mxu1 %v1617_v9 }
 0x4a3   : > { %v773_v47 = vpop.xlane.xlu0 %772 }
 0x4a4   : > { %v774_v48 = vmul.f32 0.03125, %v773_v47  ;;  %v1250_v47 = vld [vmem:[%s2050_s10 + $0xe8] sm:$0xff] }
 0x4a5   : > { %v778_v49 = vpop.xlane.xlu1 %777 }
 0x4a6   : > { %v780_v50 = vmul.f32 %v774_v48, %v774_v48  ;;  %v779_v51 = vmul.f32 0.03125, %v778_v49  ;;  %v783_v55 = vsub.f32 %v766_v38, %v774_v48  ;;  %v1494_v48 = vpack.c.bf16 %v1250_v47, %v1249_v46  ;;  %v1251_v49 = vld [vmem:[%s2050_s10 + $0xf0] sm:$0xff] }
 0x4a8   : > { %v781_v52 = vsub.f32 %v779_v51, %v780_v50  ;;  %v1252_v50 = vld [vmem:[%s2050_s10 + $0xf8] sm:$0xff] }
 0x4a9   : > { %v1497_v51 = vpack.c.bf16 %v1252_v50, %v1251_v49 }
 0x4aa   : > { %v782_v53 = vmax.f32 %v781_v52, 0.0  ;;  %v1235_v52 = vld [vmem:[%s2049_s9 + $0x1] ss:$0 sm:$0xff] }
 0x4ac   : > { %v784_v54 = vadd.f32 1e-05, %v782_v53 }
 0x4ae   : > { %1547 = vrsqrt.f32 %v784_v54 }
 0x4b8   : > { %v1548_v56 = vpop.eup %1547 }
 0x4b9   : > { %v786_v58 = vmul.f32 %v1548_v56, %v783_v55 }
 0x4bb   : > { %v793_v60 = vmul.f32 %v1217_v57, %v786_v58 }
 0x4bd   : > { %v800_v61 = vadd.f32 %v1218_v59, %v793_v60 }
 0x4bf   : > { %1379 = vmatmul.mubr.msk.f32.vlgmr.msra.gmra.mrb[0].mxu1 %vm431_vm0, %v800_v61 }
 0x4c0   : > { %1389 = vmatprep.mubr.msk.f32.mxu1 %vm1618_vm1, %v1619_v12  ;;  %1471 = vmatpush3.bf16.msra.mxu1 %v1470_v8 }
 0x4c1   : > { %1472 = vmatprep.subr.bf16.mxu1 %v1617_v9 }
 0x4c4   : > { %1474 = vmatpush3.bf16.msra.mxu1 %v1473_v13 }
 0x4c5   : > { %1475 = vmatprep.subr.bf16.mxu1 %v1617_v9 }
 0x592   : > { %v883_v63 = vpop.f32.mrb[0].mxu1 }
 0x593   : > { %v884_v0 = vadd.f32 %v1224_v62, %v883_v63  ;;  %v1380_v1 = vpop.f32.mrb[1].mxu1 }
 0x595   : > { %v1899_v2 = vadd.f32 %v884_v0, %v766_v38  ;;  %v1243_v38 = vld [vmem:[%s2050_s10 + $0xb0] sm:$0xff]  ;;  %v1254_v0 = vld [vmem:[%s2051_s11 + $0x1] ss:$0 sm:$0xff] }
 0x596   : > { %v1485_v40 = vpack.c.bf16 %v1244_v39, %v1243_v38 }
 0x597   : > { %v892_v3 = vsel %vm431_vm0, %v1899_v2, 0.0  ;;  %v896_v4 = vmul.f32 %v1899_v2, %v1899_v2 }
 0x598   : > { %893 = vadd.xlane.f32.xlu0 %v892_v3 }
 0x599   : > { %v897_v5 = vsel %vm431_vm0, %v896_v4, 0.0 }
 0x59a   : > { %898 = vadd.xlane.f32.xlu1 %v897_v5 }
 0x625   : > { %v894_v14 = vpop.xlane.xlu0 %893 }
 0x626   : > { %v895_v15 = vmul.f32 0.03125, %v894_v14 }
 0x627   : > { %v899_v16 = vpop.xlane.xlu1 %898 }
 0x628   : > { %v901_v17 = vmul.f32 %v895_v15, %v895_v15  ;;  %v900_v18 = vmul.f32 0.03125, %v899_v16  ;;  %v904_v22 = vsub.f32 %v1899_v2, %v895_v15 }
 0x62a   : > { %v902_v19 = vsub.f32 %v900_v18, %v901_v17 }
 0x62c   : > { %v903_v20 = vmax.f32 %v902_v19, 0.0 }
 0x62e   : > { %v905_v21 = vadd.f32 1e-05, %v903_v20 }
 0x630   : > { %1549 = vrsqrt.f32 %v905_v21 }
 0x63a   : > { %v1550_v23 = vpop.eup %1549 }
 0x63b   : > { %v907_v25 = vmul.f32 %v1550_v23, %v904_v22 }
 0x63d   : > { %v914_v29 = vmul.f32 %v1228_v24, %v907_v25 }
 0x63f   : > { %v921_v31 = vadd.f32 %v1229_v28, %v914_v29 }
 0x641   : > { %1390 = vmatmul.mubr.msk.f32.vlgmr.msra.gmra.mrb[2].mxu1 %vm431_vm0, %v921_v31 }
 0x642   : > { %1477 = vmatpush3.bf16.msra.mxu1 %v1476_v30  ;;  %1424 = vmatprep.mubr.msk.f32.mxu1 %vm1618_vm1, %v1619_v12  ;;  %v1242_v12 = vld [vmem:[%s2050_s10 + $0xa8] sm:$0xff] }
 0x643   : > { %1478 = vmatprep.subr.bf16.mxu1 %v1617_v9  ;;  %v1482_v37 = vpack.c.bf16 %v1242_v12, %v1241_v36 }
 0x646   : > { %1480 = vmatpush3.bf16.msra.mxu1 %v1479_v35 }
 0x647   : > { %1481 = vmatprep.subr.bf16.mxu1 %v1617_v9 }
 0x64a   : > { %1483 = vmatpush3.bf16.msra.mxu1 %v1482_v37 }
 0x64b   : > { %1484 = vmatprep.subr.bf16.mxu1 %v1617_v9 }
 0x64e   : > { %1486 = vmatpush3.bf16.msra.mxu1 %v1485_v40 }
 0x64f   : > { %1487 = vmatprep.subr.bf16.mxu1 %v1617_v9 }
 0x652   : > { %1489 = vmatpush3.bf16.msra.mxu1 %v1488_v43 }
 0x653   : > { %1490 = vmatprep.subr.bf16.mxu1 %v1617_v9 }
 0x656   : > { %1492 = vmatpush3.bf16.msra.mxu1 %v1491_v45 }
 0x657   : > { %1493 = vmatprep.subr.bf16.mxu1 %v1617_v9 }
 0x65a   : > { %1495 = vmatpush3.bf16.msra.mxu1 %v1494_v48 }
 0x65b   : > { %1496 = vmatprep.subr.bf16.mxu1 %v1617_v9 }
 0x65e   : > { %1498 = vmatpush3.bf16.msra.mxu1 %v1497_v51 }
 0x714   : > { %v1004_v53 = vpop.f32.mrb[2].mxu1 }
 0x715   : > { %v1005_v54 = vadd.f32 %v1235_v52, %v1004_v53  ;;  %v1391_v55 = vpop.f32.mrb[3].mxu1 }
 0x717   : > { %v1009_v56 = vmul.f32 0.044715, %v1005_v54  ;;  %v1008_v62 = vmul.f32 0.5, %v1005_v54 }
 0x719   : > { %v1010_v57 = vmul.f32 %v1009_v56, %v1005_v54 }
 0x71b   : > { %v1011_v58 = vmul.f32 %v1010_v57, %v1005_v54 }
 0x71d   : > { %v1012_v59 = vadd.f32 %v1011_v58, %v1005_v54 }
 0x71f   : > { %v1013_v60 = vmul.f32 0.7978846, %v1012_v59 }
 0x721   : > { %1551 = vtanh.f32 %v1013_v60 }
 0x72b   : > { %v1552_v61 = vpop.eup %1551 }
 0x72c   : > { %v1015_v63 = vadd.f32 1.0, %v1552_v61 }
 0x72e   : > { %v1016_v9 = vmul.f32 %v1015_v63, %v1008_v62 }
 0x730   : > { %1425 = vmatmul.mubr.f32.vlgmr.msra.gmra.mrb[4].mxu1 %v1016_v9 }
 0x803   : > { %v1108_v1 = vpop.f32.mrb[4].mxu1 }
 0x804   : > { %v1109_v3 = vadd.f32 %v1254_v0, %v1108_v1  ;;  %v1426_v4 = vpop.f32.mrb[5].mxu1 }
 0x806   : > { %v1112_v5 = vadd.f32 %v1109_v3, %v1899_v2 }
 0x808   : > { %1113 = vst.msk [vmem:[%s417_s30] sm:$0xff] %vm431_vm0, %v1112_v5 }
 0x809   : > { %1566 = shalt.err (!%p1563_p4)
}
 0x80a   : > { %s1567_s15 = scalar_lea.hbm %s1997_s28, 128  ;;  %s1571_s23 = scalar_lea.hbm %s2052_s12, 256 }
 0x80b   : > { %p1568_p7 = scmp.ne.s32.totalorder %s1997_s28, %s1567_s15  ;;  %p1572_p10 = scmp.lt.u32.totalorder %s1997_s28, %s2052_s12 }
 0x80c   : > { %p1573_p11 = scmp.lt.u32.totalorder %s1571_s23, %s1567_s15  ;;  %p1575_p13 = scmp.lt.u32.totalorder %s1567_s15, %s1997_s28 }
 0x80d   : > { %p1569_p8 = pnand %p1568_p7, %p1724_p5 }
 0x80e   : > { %p1574_p12 = por %p1573_p11, %p1572_p10 }
 0x80f   : > { %p1570_p9 = pneg %p1569_p8 }
 0x810   : > { %p1576_p0 = por %p1575_p13, %p1574_p12 }
 0x812   : > { %p1577_p1 = pnand %p1576_p0, %p1570_p9 }
 0x814   : > { %1580 = shalt.err (!%p1577_p1)
}
 0x815   : > { %1499 = dma.vmem_to_hbm [thread:$0]  (%p1724_p5), %s1999_s20, 128, %s1997_s28, %s1115_s29  }
 0x816 PF: > { %p1505_p2 = scmp.ge.s32.totalorder %s1615_s24, 2  ;;  %s1140_s25 = sand.u32 1, %s1603_s21  }
 0x817   : > { %s1141_s17 = scalar_lea.sflag [#allocation3], %s1140_s25 }
 0x818   : > { %p1502_p3 = pnand %p1505_p2, %p1728_p6 }
 0x81a   : > { %1598 = dma.done.wait (!%p1502_p3), %s1141_s17, 128  }
 0x81b   : > { %1600 = vsyncadd (!%p1502_p3), %s1141_s17, 4294967168  ;;  %s2058_s18 = sld [smem:[#allocation5_spill]]  ;;  %s2059_s23 = sld [smem:[#allocation6_spill]] }
 0x81c   : > { %p22_p4 = scmp.ge.s32.totalorder %s1711_s27, 4   ;;  %s2060_s21 = smov %s1607_s22 }
 0x81d   : > { %s2062_s24 = smov %s1711_s27 }
 0x81e   :  { %24 = sbr.rel (!%p22_p4) target bundleno = 3 (0x3), region = 116 }
 0x821   : > { %s2061_s22 = smov %s2058_s18 }
 0x825   :  { %1146 = vsyncpa [#allocation3], 1 }
 0x826   :  { %1148 = vsyncpa [#allocation3 + $0x1], 1 }

</bundles_post_ra>
